<compile_context>
chip_gen: v7x
topology: tpu7x:2x2x1
jax: 0.10.0
libtpu: 0.0.40
codegen_flags: <defaults>
</compile_context>

<pallas_src>
import functools

import jax
import jax.numpy as jnp
from jax import lax
from jax.experimental import pallas as pl
from jax.experimental.pallas import tpu as pltpu


def _round_up(x, m):
    return ((x + m - 1) // m) * m


def _center_loss_kernel(lab_ref, feat_ref, centers_ref, out_ref, acc_ref, *,
                        n_valid, block_rows, num_classes, scale):
    # lab_ref:     VMEM (TB, 1)      int32   labels for this row tile
    # feat_ref:    VMEM (TB, D_pad)  float32 feature rows for this tile
    # centers_ref: VMEM (C,  D_pad)  float32 full centers table (resident)
    # out_ref:     VMEM (1, 1)       float32 final scalar loss (written once)
    # acc_ref:     VMEM (TB, D_pad)  float32 elementwise squared-diff accumulator
    t = pl.program_id(0)

    @pl.when(t == 0)
    def _():
        acc_ref[...] = jnp.zeros_like(acc_ref)

    labels = lab_ref[...]                                                 # (TB, 1) i32
    class_ids = lax.broadcasted_iota(jnp.int32, (block_rows, num_classes), 1)
    row_ids = t * block_rows + lax.broadcasted_iota(jnp.int32, (block_rows, 1), 0)

    # One-hot gather of centers[label] on the MXU; padded rows (>= n_valid)
    # get an all-zero one-hot row, and their (zero-padded) features give d==0.
    onehot = jnp.logical_and(labels == class_ids,
                             row_ids < n_valid).astype(jnp.float32)       # (TB, C)
    gathered = jnp.dot(onehot, centers_ref[...],
                       preferred_element_type=jnp.float32)                # (TB, D_pad)

    d = feat_ref[...] - gathered
    acc_ref[...] += d * d                                                 # pure VPU

    @pl.when(t == pl.num_programs(0) - 1)
    def _():
        out_ref[...] = jnp.reshape(jnp.sum(acc_ref[...]), (1, 1)) * scale


def center_loss(label, feat, centers, size_average=True, block_rows=256):
    """Pallas implementation of CenterLoss.forward.

    label:   (B,) integer class ids
    feat:    (B, ...) features, flattened to (B, feat_dim)
    centers: (num_classes, feat_dim)
    """
    B = feat.shape[0]
    feat2 = feat.reshape(B, -1).astype(jnp.float32)
    D = feat2.shape[1]
    C = centers.shape[0]
    if D != centers.shape[1]:
        raise ValueError(
            "Center's dim: {0} should be equal to input feature's dim: {1}".format(
                centers.shape[1], D))

    # Lane-dense padding of the feature dim; row tile is a multiple of 8.
    D_pad = _round_up(D, 128)
    TB = min(_round_up(block_rows, 8), _round_up(B, 8))

    # Keep the VMEM footprint modest (safe on v7x 64 MiB / v5e 16 MiB scoped).
    def footprint(tb):
        return (2 * tb * D_pad * 4        # feat tile, double-buffered
                + 2 * tb * 128 * 4        # labels tile (lane-padded), double-buffered
                + 2 * C * D_pad * 4       # resident centers (conservative x2)
                + tb * D_pad * 4          # accumulator scratch
                + 4096)

    budget = 12 * 1024 * 1024
    while TB > 8 and footprint(TB) > budget:
        TB = _round_up(max(8, TB // 2), 8)
    # TODO(synk): if C * D_pad * 4 alone exceeds the VMEM budget, tile centers along D.

    B_pad = _round_up(B, TB)
    num_tiles = B_pad // TB

    feat_p = jnp.pad(feat2, ((0, B_pad - B), (0, D_pad - D)))
    centers_p = jnp.pad(centers.astype(jnp.float32), ((0, 0), (0, D_pad - D)))
    labels_p = jnp.pad(label.astype(jnp.int32), (0, B_pad - B)).reshape(B_pad, 1)

    denom = float(B) if size_average else 1.0
    scale = 1.0 / (2.0 * denom)

    kernel = functools.partial(
        _center_loss_kernel,
        n_valid=B, block_rows=TB, num_classes=C, scale=scale)

    out = pl.pallas_call(
        kernel,
        out_shape=jax.ShapeDtypeStruct((1, 1), jnp.float32),
        grid_spec=pltpu.PrefetchScalarGridSpec(
            num_scalar_prefetch=0,
            grid=(num_tiles,),
            in_specs=[
                pl.BlockSpec((TB, 1), lambda t: (t, 0)),       # labels tile
                pl.BlockSpec((TB, D_pad), lambda t: (t, 0)),   # feat tile
                pl.BlockSpec((C, D_pad), lambda t: (0, 0)),    # centers, resident
            ],
            out_specs=pl.BlockSpec((1, 1), lambda t: (0, 0)),
            scratch_shapes=[pltpu.VMEM((TB, D_pad), jnp.float32)],
        ),
        compiler_params=pltpu.CompilerParams(
            dimension_semantics=("arbitrary",),    # accumulator across batch tiles
            vmem_limit_bytes=32 * 1024 * 1024,
        ),
    )(labels_p, feat_p, centers_p)

    return out[0, 0]


def center_loss_ref(label, feat, centers, size_average=True):
    B = feat.shape[0]
    feat2 = feat.reshape(B, -1).astype(jnp.float32)
    cb = centers.astype(jnp.float32)[label]
    denom = float(B) if size_average else 1.0
    return jnp.sum((feat2 - cb) ** 2) / 2.0 / denom


if __name__ == "__main__":
    num_classes = 10
    feat_dim = 32
    batch = 8

    key = jax.random.PRNGKey(0)
    k_centers, k_feat, k_label = jax.random.split(key, 3)

    # nn.Parameter(torch.randn(num_classes, feat_dim)) -> deterministic normal init
    centers = jax.random.normal(k_centers, (num_classes, feat_dim), dtype=jnp.float32)
    feat = jax.random.normal(k_feat, (batch, feat_dim), dtype=jnp.float32)
    label = jax.random.randint(k_label, (batch,), 0, num_classes, dtype=jnp.int32)

    loss = center_loss(label, feat, centers, size_average=True)
    loss = jax.block_until_ready(loss)
    ref = center_loss_ref(label, feat, centers, size_average=True)
    assert jnp.allclose(loss, ref, rtol=1e-5, atol=1e-5), (loss, ref)

    # Extra check: non-multiple-of-8 batch (exercises row padding/masking) and
    # size_average=False path.
    k2f, k2l = jax.random.split(jax.random.PRNGKey(1))
    feat2 = jax.random.normal(k2f, (13, feat_dim), dtype=jnp.float32)
    label2 = jax.random.randint(k2l, (13,), 0, num_classes, dtype=jnp.int32)
    loss2 = jax.block_until_ready(center_loss(label2, feat2, centers, size_average=False))
    ref2 = center_loss_ref(label2, feat2, centers, size_average=False)
    assert jnp.allclose(loss2, ref2, rtol=1e-5, atol=1e-5), (loss2, ref2)

    print("KERNEL_OK")
</pallas_src>

<mosaic_0001>
module attributes {stable_mosaic.version = 11 : i64} {
  func.func @_center_loss_kernel(%arg0: i32, %arg1: memref<8x1xi32, #tpu.memory_space<vmem>>, %arg2: memref<8x128xf32, #tpu.memory_space<vmem>>, %arg3: memref<10x128xf32, #tpu.memory_space<vmem>>, %arg4: memref<1x1xf32, #tpu.memory_space<vmem>>, %arg5: memref<8x128xf32, #tpu.memory_space<vmem>>) attributes {dimension_semantics = [#tpu.dimension_semantics<arbitrary>], iteration_bounds = array<i64: 1>, scalar_prefetch = 0 : i64, scratch_operands = 1 : i64, tpu.core_type = #tpu.core_type<tc>, window_params = [{transform_indices = @transform_0, window_bounds = array<i64: 8, 1>}, {transform_indices = @transform_1, window_bounds = array<i64: 8, 128>}, {pipeline_mode = #tpu.pipeline_mode<synchronous>, transform_indices = @transform_2, window_bounds = array<i64: 10, 128>}, {pipeline_mode = #tpu.pipeline_mode<synchronous>, transform_indices = @transform_3, window_bounds = array<i64: 1, 1>}]} {
    %c0_i32 = arith.constant 0 : i32
    %0 = arith.cmpi eq, %arg0, %c0_i32 : i32
    %1 = arith.extui %0 : i1 to i32
    %c0_i32_0 = arith.constant 0 : i32
    %2 = arith.cmpi ne, %1, %c0_i32_0 : i32
    scf.if %2 {
      %cst_13 = arith.constant 0.000000e+00 : f32
      %28 = vector.broadcast %cst_13 : f32 to vector<8x128xf32>
      %c0_14 = arith.constant 0 : index
      %c0_15 = arith.constant 0 : index
      %29 = vector.load %arg5[%c0_14, %c0_15] : memref<8x128xf32, #tpu.memory_space<vmem>>, vector<8x128xf32>
      tpu.vector_store %arg5[%c0_14, %c0_15], %28 {strides = array<i32>} : memref<8x128xf32, #tpu.memory_space<vmem>>, vector<8x128xf32>,
    } else {
    }
    %c0 = arith.constant 0 : index
    %c0_1 = arith.constant 0 : index
    %3 = vector.load %arg1[%c0, %c0_1] : memref<8x1xi32, #tpu.memory_space<vmem>>, vector<8x1xi32>
    %4 = tpu.iota {dimensions = array<i32: 1>} : vector<8x10xi32>
    %c8_i32 = arith.constant 8 : i32
    %5 = arith.muli %arg0, %c8_i32 : i32
    %6 = tpu.iota {dimensions = array<i32: 0>} : vector<8x1xi32>
    %7 = vector.broadcast %5 : i32 to vector<8x1xi32>
    %8 = arith.addi %7, %6 : vector<8x1xi32>
    %9 = vector.broadcast %3 : vector<8x1xi32> to vector<8x10xi32>
    %10 = arith.cmpi eq, %9, %4 : vector<8x10xi32>
    %c8_i32_2 = arith.constant 8 : i32
    %11 = vector.broadcast %c8_i32_2 : i32 to vector<8x1xi32>
    %12 = arith.cmpi slt, %8, %11 : vector<8x1xi32>
    %13 = vector.broadcast %12 : vector<8x1xi1> to vector<8x10xi1>
    %14 = arith.andi %10, %13 : vector<8x10xi1>
    %15 = arith.extui %14 : vector<8x10xi1> to vector<8x10xi32>
    %16 = arith.sitofp %15 : vector<8x10xi32> to vector<8x10xf32>
    %c0_3 = arith.constant 0 : index
    %c0_4 = arith.constant 0 : index
    %17 = vector.load %arg3[%c0_3, %c0_4] : memref<10x128xf32, #tpu.memory_space<vmem>>, vector<10x128xf32>
    %cst = arith.constant dense<0.000000e+00> : vector<8x128xf32>
    %18 = tpu.matmul %16, %17, %cst {dimension_numbers = #tpu.dot_dimension_numbers<[1], [0], [0], [1], [0, 0, 1, 1], [], []>} : vector<8x10xf32>, vector<10x128xf32>, vector<8x128xf32> -> vector<8x128xf32>
    %c0_5 = arith.constant 0 : index
    %c0_6 = arith.constant 0 : index
    %19 = vector.load %arg2[%c0_5, %c0_6] : memref<8x128xf32, #tpu.memory_space<vmem>>, vector<8x128xf32>
    %20 = arith.subf %19, %18 : vector<8x128xf32>
    %c0_7 = arith.constant 0 : index
    %c0_8 = arith.constant 0 : index
    %21 = vector.load %arg5[%c0_7, %c0_8] : memref<8x128xf32, #tpu.memory_space<vmem>>, vector<8x128xf32>
    %22 = arith.mulf %20, %20 : vector<8x128xf32>
    %23 = arith.addf %21, %22 : vector<8x128xf32>
    %c0_9 = arith.constant 0 : index
    %c0_10 = arith.constant 0 : index
    %24 = vector.load %arg5[%c0_9, %c0_10] : memref<8x128xf32, #tpu.memory_space<vmem>>, vector<8x128xf32>
    tpu.vector_store %arg5[%c0_9, %c0_10], %23 {strides = array<i32>} : memref<8x128xf32, #tpu.memory_space<vmem>>, vector<8x128xf32>,
    %c0_i32_11 = arith.constant 0 : i32
    %25 = arith.cmpi eq, %arg0, %c0_i32_11 : i32
    %26 = arith.extui %25 : i1 to i32
    %c0_i32_12 = arith.constant 0 : i32
    %27 = arith.cmpi ne, %26, %c0_i32_12 : i32
    scf.if %27 {
      %c0_13 = arith.constant 0 : index
      %c0_14 = arith.constant 0 : index
      %28 = vector.load %arg5[%c0_13, %c0_14] : memref<8x128xf32, #tpu.memory_space<vmem>>, vector<8x128xf32>
      %29 = vector.shape_cast %28 : vector<8x128xf32> to vector<1x8x128xf32>
      %cst_15 = arith.constant dense<0.000000e+00> : vector<1xf32>
      %30 = vector.multi_reduction <add>, %29, %cst_15 [1, 2] : vector<1x8x128xf32> to vector<1xf32>
      %31 = vector.shape_cast %30 : vector<1xf32> to vector<1x1x1xf32>
      %32 = vector.extract %31[0, 0, 0] : f32 from vector<1x1x1xf32>
      %33 = vector.broadcast %32 : f32 to vector<1x1xf32>
      %cst_16 = arith.constant 6.250000e-02 : f32
      %34 = vector.broadcast %cst_16 : f32 to vector<1x1xf32>
      %35 = arith.mulf %33, %34 : vector<1x1xf32>
      %c0_17 = arith.constant 0 : index
      %c0_18 = arith.constant 0 : index
      %36 = vector.load %arg4[%c0_17, %c0_18] : memref<1x1xf32, #tpu.memory_space<vmem>>, vector<1x1xf32>
      tpu.vector_store %arg4[%c0_17, %c0_18], %35 {strides = array<i32>} : memref<1x1xf32, #tpu.memory_space<vmem>>, vector<1x1xf32>,
    } else {
    }
    return
  }
  func.func @transform_0(%arg0: i32) -> (i32, i32) {
    %c0_i32 = arith.constant 0 : i32
    %c0_i32_0 = arith.constant 0 : i32
    return %arg0, %c0_i32 : i32, i32
  }
  func.func @transform_1(%arg0: i32) -> (i32, i32) {
    %c0_i32 = arith.constant 0 : i32
    %c0_i32_0 = arith.constant 0 : i32
    return %arg0, %c0_i32 : i32, i32
  }
  func.func @transform_2(%arg0: i32) -> (i32, i32) {
    %c0_i32 = arith.constant 0 : i32
    %c0_i32_0 = arith.constant 0 : i32
    %c0_i32_1 = arith.constant 0 : i32
    return %c0_i32, %c0_i32_0 : i32, i32
  }
  func.func @transform_3(%arg0: i32) -> (i32, i32) {
    %c0_i32 = arith.constant 0 : i32
    %c0_i32_0 = arith.constant 0 : i32
    %c0_i32_1 = arith.constant 0 : i32
    return %c0_i32, %c0_i32_0 : i32, i32
  }
}

</mosaic_0001>

<bundles_post_ra>
// kernel: tpu_custom_call.1
= control target key start
LH: loop header
LB: loop body
LE: loop exit
PB: predicated region body
PF: predicated region fallthrough
CT: control target
= control target key end

     0   :  { %8 = vsyncpa [#allocation4], 0  ;;  %s303_s0 = inlined_call_operand.vmem [shape: s32[8,1], index: 0, kind: input, shape index: {}]   ;;  %s304_s1 = inlined_call_operand.hbm [shape: f32[8,128], index: 1, kind: input, shape index: {}]   ;;  %s305_s2 = inlined_call_operand.vmem [shape: f32[10,128], index: 2, kind: input, shape index: {}]   ;;  %s306_s3 = inlined_call_operand.hbm [shape: f32[1,1], index: 3, kind: output, shape index: {}]  }
   0x1   :  { %9 = vsyncpa [#allocation5], 0  ;;  %s243_s12 = smov [#allocation3]   ;;  %s195_s16 = scalar_lea.hbm %s304_s1, 128 }
   0x2   :  { %s18_s13 = sshll.u32 %s243_s12, 4  ;;  %p196_p0 = scmp.ne.s32.totalorder %s304_s1, %s195_s16  ;;  %s19_s13 = int_to_ptr.vmem [resolvable:$true] %s18_s13 }
   0x3   :  { %p199_p1 = scmp.lt.u32.totalorder %s195_s16, %s304_s1 }
   0x5   :  { %p201_p2 = pnand %p199_p1, %p196_p0 }
   0x7   :  { %204 = shalt.err (!%p201_p2)
}
   0x8   :  { %s205_s21 = scalar_lea.vmem %s19_s13, 128  ;;  %p210_p4 = scmp.lt.s32.totalorder %s19_s13, %s19_s13 }
   0x9   :  { %p206_p3 = scmp.ne.s32.totalorder %s19_s13, %s205_s21  ;;  %p211_p5 = scmp.lt.s32.totalorder %s205_s21, %s205_s21 }
   0xb   :  { %p212_p6 = por %p211_p5, %p210_p4 }
   0xd   :  { %p213_p7 = pnand %p212_p6, %p206_p3 }
   0xf   :  { %216 = shalt.err (!%p213_p7)
}
  0x10   :  { %21 = dma.hbm_to_vmem [thread:$0]  %s304_s1, 128, %s19_s13, [#allocation4]  }
  0x11   :  { %239 = dma.done.wait [#allocation4], 128  }
  0x12   :  { %240 = vsyncadd [#allocation4], 4294967168  ;;  %v244_v0 = vmov 0   ;;  %v245_v1 = vmov 0.0|0.0   ;;  %vm56_vm0 = vcmask 1041408   ;;  %vm246_vm1 = vmmov 1  }
  0x13   :  { %194 = vset.pattern.permute.xlu0 %v244_v0  ;;  %181 = vmatprep.subr.bf16.mxu0 %v245_v1  ;;  %vm183_vm2 = vmpackc.low %vm56_vm0, %vm246_vm1  ;;  %v32_v2 = vld [vmem:[%s303_s0] sm:$0xff]  ;;  %v51_v4 = vld [vmem:[%s305_s2 + $0x8] sm:$0x3]  ;;  %vm247_vm3 = vmmov 0   ;;  %v248_v6 = vmov 0.0   ;;  %v33_v7 = vlaneseq  ;;  %vm52_vm4 = vcmask 80896  }
  0x14   :  { %v50_v3 = vld [vmem:[%s305_s2] sm:$0xff]  ;;  %41 = vperm.xlu0 %194, %v32_v2   ;;  %178 = vmatprep.mubr.msk.f32.mxu0 %vm247_vm3, %v248_v6  ;;  %v130_v11 = vld [vmem:[#allocation3] sm:$0xff]  ;;  %s249_s0 = smov [#allocation6]   ;;  %vm151_vm6 = vcmask 0  }
  0x15   :  { %v182_v5 = vpack.c.bf16 %v51_v4, %v50_v3  ;;  %v34_v8 = vand.u32 127, %v33_v7  ;;  %s159_s1 = sshll.u32 %s249_s0, 4  ;;  %s160_s1 = int_to_ptr.vmem [resolvable:$true] %s159_s1 }
  0x16   :  { %s217_s30 = scalar_lea.vmem %s160_s1, 16  ;;  %s221_s4 = scalar_lea.vmem %s160_s1, 32 }
  0x17   :  { %184 = vmatpush3.bf16.msk.msra.mxu0 %vm183_vm2, %v182_v5  ;;  %p218_p8 = scmp.ne.s32.totalorder %s160_s1, %s217_s30  ;;  %p222_p9 = scmp.lt.s32.totalorder %s160_s1, %s160_s1 }
  0x18   :  { %p223_p10 = scmp.lt.s32.totalorder %s221_s4, %s217_s30 }
  0x1a   :  { %p224_p11 = por %p223_p10, %p222_p9 }
  0x1c   :  { %p225_p12 = pnand %p224_p11, %p218_p8 }
  0x93   :  { %v42_v9 = vpop.permute.xlu0 %41 }
  0x94   :  { %vm43_vm5 = vcmp.eq.s32.totalorder %v42_v9, %v34_v8 }
  0x95   :  { %v168_v10 = vsel %vm43_vm5, 1.0, %v248_v6 }
  0x96   :  { %179 = vmatmul.mubr.msk.f32.vlgmr.msra.gmra.mrb[0].mxu0 %vm52_vm4, %v168_v10 }
 0x169   :  { %v126_v12 = vpop.f32.mrb[0].mxu0 }
 0x16a   :  { %v131_v13 = vsub.f32 %v130_v11, %v126_v12  ;;  %v180_v14 = vpop.f32.mrb[1].mxu0 }
 0x16c   :  { %v133_v15 = vmul.f32 %v131_v13, %v131_v13 }
 0x16e   :  { %140 = vadd.xlane.f32.xlu0 %v133_v15 }
 0x1fb   :  { %v141_v16 = vpop.xlane.xlu0 %140 }
 0x1fc   :  { %v142_v17 = vrot.slane %v141_v16, 4 }
 0x1fe   :  { %v143_v18 = vadd.f32 %v142_v17, %v141_v16 }
 0x200   :  { %v144_v19 = vrot.slane %v143_v18, 2 }
 0x202   :  { %v145_v20 = vadd.f32 %v144_v19, %v143_v18 }
 0x204   :  { %v146_v21 = vrot.slane %v145_v20, 1 }
 0x206   :  { %v147_v22 = vadd.f32 %v146_v21, %v145_v20 }
 0x208   :  { %185 = vpush %v147_v22 }
 0x239   :  { %s186_s2 = spop %185 }
 0x23a   :  { %v149_v23 = vstv %s186_s2 }
 0x23b   :  { %v150_v24 = vmul.f32 0.0625, %v149_v23 }
 0x23d   :  { %152 = vst.msk [vmem:[#allocation6] sm:$0x1] %vm151_vm6, %v150_v24 }
 0x23e   :  { %228 = shalt.err (!%p225_p12)
}
 0x23f   :  { %s229_s7 = scalar_lea.hbm %s306_s3, 16 }
 0x240   :  { %p230_p13 = scmp.ne.s32.totalorder %s306_s3, %s229_s7  ;;  %p233_p0 = scmp.lt.u32.totalorder %s229_s7, %s306_s3 }
 0x242   :  { %p235_p1 = pnand %p233_p0, %p230_p13 }
 0x244   :  { %238 = shalt.err (!%p235_p1)
}
 0x245   :  { %162 = dma.vmem_to_hbm [thread:$0]  %s160_s1, 16, %s306_s3, [#allocation5]  }
 0x246   :  { %241 = dma.done.wait [#allocation5], 16  }
 0x247   :  { %242 = vsyncadd [#allocation5], 4294967280 }
 0x248   :  { %166 = vsyncpa [#allocation4], 1 }
 0x249   :  { %167 = vsyncpa [#allocation5], 1 }

</bundles_post_ra>
